<compile_context>
chip_gen: v7x
topology: tpu7x:2x2x1
jax: 0.10.0
libtpu: 0.0.40
codegen_flags: <defaults>
</compile_context>

<pallas_src>
import functools

import jax
import jax.numpy as jnp
from jax import lax
from jax.experimental import pallas as pl
from jax.experimental.pallas import tpu as pltpu


def _round_up(x, m):
    return ((x + m - 1) // m) * m


def _round_down(x, m):
    return (x // m) * m


def _cdiv(a, b):
    return -(-a // b)


# --------------------------------------------------------------------------- #
# Kernel: one batch tile of the full 3-layer MLP, transposed (batch-on-lanes)
# dataflow for the hidden layers.
#   x_ref   : (TB, D)      natural layout (streamed, double-buffered)
#   w1t_ref : (H1, D)      VMEM-resident across batch tiles
#   w2t_ref : (H2, H1)     VMEM-resident
#   w3t_ref : (A_pad, H2)  VMEM-resident
#   b_ref   : (BTOT, 1)    packed [b1 ; b2 ; b3_pad] column, 8-aligned segments
#   o_ref   : (A_pad, TB)  logits^T, lane-dense (unmasked stores)
# --------------------------------------------------------------------------- #
def _policy_kernel(x_ref, w1t_ref, w2t_ref, w3t_ref, b_ref, o_ref, *,
                   h1_dim, h2_dim, h2_off, b3_off, a_pad):
    def _f32(ref):
        v = ref[...]
        return v if v.dtype == jnp.float32 else v.astype(jnp.float32)

    x = _f32(x_ref)                                   # (TB, D)
    b1 = b_ref[0:h1_dim, :]                           # (H1, 1)
    b2 = b_ref[h2_off:h2_off + h2_dim, :]             # (H2, 1)
    b3 = b_ref[b3_off:b3_off + a_pad, :]              # (A_pad, 1)

    # Layer 1: contract the LAST dims of (H1, D) x (TB, D) -> (H1, TB).
    # x keeps its natural HBM layout; any (TB,D)->(D,TB) reorientation is done
    # on-chip (XLU slot is otherwise idle) and overlaps with the streaming DMA.
    h1 = lax.dot_general(_f32(w1t_ref), x, (((1,), (1,)), ((), ())),
                         preferred_element_type=jnp.float32)
    h1 = jnp.maximum(h1 + b1, 0.0)                    # (H1, TB) lane-dense VPU

    h2 = jnp.dot(_f32(w2t_ref), h1, preferred_element_type=jnp.float32)
    h2 = jnp.maximum(h2 + b2, 0.0)                    # (H2, TB)

    out = jnp.dot(_f32(w3t_ref), h2, preferred_element_type=jnp.float32) + b3
    o_ref[...] = out.astype(o_ref.dtype)              # (A_pad, TB) dense store


# --------------------------------------------------------------------------- #
# One-time parameter packing (hoisted out of the forward path).
# params: w1 (D,H1), b1 (1,H1), w2 (H1,H2), b2 (1,H2), w3 (H2,A), b3 (1,A).
# --------------------------------------------------------------------------- #
def pack_params(params, weight_dtype=jnp.float32):
    w1, b1 = params["w1"], params["b1"]
    w2, b2 = params["w2"], params["b2"]
    w3, b3 = params["w3"], params["b3"]
    D, H1 = w1.shape
    H2 = w2.shape[1]
    A = w3.shape[1]
    A_pad = _round_up(A, 8)

    w1t = jnp.asarray(w1.T, weight_dtype)                            # (H1, D)
    w2t = jnp.asarray(w2.T, weight_dtype)                            # (H2, H1)
    w3t = jnp.pad(jnp.asarray(w3.T, weight_dtype),                   # (A_pad, H2)
                  ((0, A_pad - A), (0, 0)))

    # Pack the three biases into one f32 column (one input / one DMA slot),
    # with sublane(8)-aligned segment offsets.  Bias add / ReLU stay f32.
    h2_off = _round_up(H1, 8)
    b3_off = h2_off + _round_up(H2, 8)
    b_tot = b3_off + A_pad
    b_packed = jnp.zeros((b_tot, 1), jnp.float32)
    b_packed = b_packed.at[0:H1, 0].set(b1.reshape(-1).astype(jnp.float32))
    b_packed = b_packed.at[h2_off:h2_off + H2, 0].set(
        b2.reshape(-1).astype(jnp.float32))
    b_packed = b_packed.at[b3_off:b3_off + A, 0].set(
        b3.reshape(-1).astype(jnp.float32))

    dims = dict(D=D, H1=H1, H2=H2, A=A, A_pad=A_pad,
                h2_off=h2_off, b3_off=b3_off, b_tot=b_tot)
    return dict(w1t=w1t, w2t=w2t, w3t=w3t, b=b_packed, dims=dims)


# --------------------------------------------------------------------------- #
# Forward: logits = MLP(x).   x: (B, D) f32.  Returns (B, A) f32 by default,
# or (A, B) with return_transposed=True (skips the final XLA transpose pass).
# --------------------------------------------------------------------------- #
def categorical_policy_forward(x, packed, *, max_batch_tile=8192,
                               return_transposed=False):
    dims = packed["dims"]
    D, H1, H2 = dims["D"], dims["H1"], dims["H2"]
    A, A_pad = dims["A"], dims["A_pad"]
    h2_off, b3_off, b_tot = dims["h2_off"], dims["b3_off"], dims["b_tot"]

    B, Dx = x.shape
    assert Dx == D, f"obs dim mismatch: {Dx} vs {D}"
    max_batch_tile = max(128, _round_up(int(max_batch_tile), 128))  # lane rule

    # ---- VMEM-budgeted batch-tile selection ---------------------------------
    try:
        vmem_cap = int(getattr(pltpu.get_tpu_info(), "vmem_capacity_bytes",
                               64 << 20))
    except Exception:
        vmem_cap = 64 << 20                       # conservative (v7x per-TC)
    vmem_budget = min(vmem_cap // 2, 48 << 20)

    w_bytes = (packed["w1t"].nbytes + packed["w2t"].nbytes
               + packed["w3t"].nbytes + packed["b"].nbytes)
    # Per batch-row VMEM cost: x block (lane-padded to 128, double-buffered),
    # transposed out block (double-buffered), and the two f32 intermediates.
    bytes_per_row = (2 * _round_up(D, 128) * x.dtype.itemsize
                     + 2 * A_pad * 4
                     + (H1 + H2) * 4)
    tb_budget = (vmem_budget - 2 * w_bytes - (1 << 20)) // bytes_per_row
    tb_cap = max(128, min(max_batch_tile, _round_down(max(tb_budget, 128), 128)))

    B128 = _round_up(B, 128)
    min_tiles = 2 if B128 >= 256 else 1           # keep both v7x TCs busy
    tb0 = max(128, min(tb_cap, _round_down(B128 // min_tiles, 128)))
    num_tiles = _cdiv(B128, tb0)
    TB = _round_up(_cdiv(B128, num_tiles), 128)   # waste < 128 rows per tile
    B_pad = num_tiles * TB

    x_in = x if B_pad == B else jnp.pad(x, ((0, B_pad - B), (0, 0)))

    vmem_limit = int(min(vmem_cap - (1 << 20),
                         max(32 << 20,
                             2 * w_bytes + TB * bytes_per_row + (4 << 20))))

    kernel = functools.partial(_policy_kernel, h1_dim=H1, h2_dim=H2,
                               h2_off=h2_off, b3_off=b3_off, a_pad=A_pad)

    flops = 2 * B_pad * (D * H1 + H1 * H2 + H2 * A_pad)
    bytes_accessed = x_in.nbytes + 4 * A_pad * B_pad + w_bytes

    out_t = pl.pallas_call(
        kernel,
        out_shape=jax.ShapeDtypeStruct((A_pad, B_pad), jnp.float32),
        grid=(num_tiles,),
        in_specs=[
            pl.BlockSpec((TB, D), lambda i: (i, 0)),       # x: natural layout, streamed
            pl.BlockSpec((H1, D), lambda i: (0, 0)),       # weights stay VMEM-resident
            pl.BlockSpec((H2, H1), lambda i: (0, 0)),
            pl.BlockSpec((A_pad, H2), lambda i: (0, 0)),
            pl.BlockSpec((b_tot, 1), lambda i: (0, 0)),    # packed biases
        ],
        out_specs=pl.BlockSpec((A_pad, TB), lambda i: (0, i)),
        compiler_params=pltpu.CompilerParams(
            dimension_semantics=("parallel",),
            vmem_limit_bytes=vmem_limit),
        cost_estimate=pl.CostEstimate(
            flops=flops, transcendentals=0, bytes_accessed=bytes_accessed),
    )(x_in, packed["w1t"], packed["w2t"], packed["w3t"], packed["b"])

    if return_transposed:
        return out_t[:A, :B]        # (A, B): no extra HBM transpose pass
    return out_t[:A, :B].T          # (B, A): module's forward semantics


def init_params(key, obs_dim, hidden1, hidden2, action_dim):
    """Deterministic synthetic parameter init (PyTorch-Linear-like uniform)."""
    ks = jax.random.split(key, 6)

    def linear(kw, kb, fan_in, fan_out):
        bound = 1.0 / jnp.sqrt(jnp.float32(fan_in))
        w = jax.random.uniform(kw, (fan_in, fan_out), jnp.float32, -bound, bound)
        b = jax.random.uniform(kb, (1, fan_out), jnp.float32, -bound, bound)
        return w, b

    w1, b1 = linear(ks[0], ks[1], obs_dim, hidden1)
    w2, b2 = linear(ks[2], ks[3], hidden1, hidden2)
    w3, b3 = linear(ks[4], ks[5], hidden2, action_dim)
    return {"w1": w1, "b1": b1, "w2": w2, "b2": b2, "w3": w3, "b3": b3}


if __name__ == "__main__":
    # Shapes consistent with the module: observation_space.shape = (16,),
    # action_space.n = 4, network_params = [("mlp", 32), ("mlp", 32)].
    B, OBS, H1, H2, A = 2, 16, 32, 32, 4

    key = jax.random.PRNGKey(0)
    k_obs, k_params = jax.random.split(key)
    obs = jax.random.normal(k_obs, (B, OBS), dtype=jnp.float32)
    params = init_params(k_params, OBS, H1, H2, A)

    def ref_forward(xx, p):
        a1 = jnp.maximum(xx @ p["w1"] + p["b1"], 0.0)
        a2 = jnp.maximum(a1 @ p["w2"] + p["b2"], 0.0)
        return a2 @ p["w3"] + p["b3"]

    # (1) f32 weights, tiny batch (the module's nominal usage).
    packed = pack_params(params)                       # hoisted out of forward
    logits = jax.block_until_ready(categorical_policy_forward(obs, packed))
    ref = ref_forward(obs, params)
    assert logits.shape == (B, A)
    assert jnp.allclose(logits, ref, atol=1e-4, rtol=1e-4)

    # (2) bf16 weights + non-multiple-of-128 batch (exercises padding,
    #     multi-tile grid, and the reduced-HBM weight path).
    B2 = 300
    obs2 = jax.random.normal(jax.random.PRNGKey(1), (B2, OBS), dtype=jnp.float32)
    packed_bf16 = pack_params(params, weight_dtype=jnp.bfloat16)
    logits2 = jax.block_until_ready(
        categorical_policy_forward(obs2, packed_bf16))
    ref2 = ref_forward(obs2, params)
    assert logits2.shape == (B2, A)
    assert jnp.allclose(logits2, ref2, atol=5e-2, rtol=5e-2)

    print("KERNEL_OK")
</pallas_src>

<mosaic_0001>
module attributes {stable_mosaic.version = 11 : i64} {
  func.func @_policy_kernel(%arg0: i32, %arg1: memref<128x16xf32, #tpu.memory_space<vmem>>, %arg2: memref<32x16xf32, #tpu.memory_space<vmem>>, %arg3: memref<32x32xf32, #tpu.memory_space<vmem>>, %arg4: memref<8x32xf32, #tpu.memory_space<vmem>>, %arg5: memref<72x1xf32, #tpu.memory_space<vmem>>, %arg6: memref<8x128xf32, #tpu.memory_space<vmem>>) attributes {dimension_semantics = [#tpu.dimension_semantics<parallel>], iteration_bounds = array<i64: 1>, scalar_prefetch = 0 : i64, scratch_operands = 0 : i64, tpu.core_type = #tpu.core_type<tc>, window_params = [{transform_indices = @transform_0, window_bounds = array<i64: 128, 16>}, {pipeline_mode = #tpu.pipeline_mode<synchronous>, transform_indices = @transform_1, window_bounds = array<i64: 32, 16>}, {pipeline_mode = #tpu.pipeline_mode<synchronous>, transform_indices = @transform_2, window_bounds = array<i64: 32, 32>}, {pipeline_mode = #tpu.pipeline_mode<synchronous>, transform_indices = @transform_3, window_bounds = array<i64: 8, 32>}, {pipeline_mode = #tpu.pipeline_mode<synchronous>, transform_indices = @transform_4, window_bounds = array<i64: 72, 1>}, {transform_indices = @transform_5, window_bounds = array<i64: 8, 128>}]} {
    %c0 = arith.constant 0 : index
    %c0_0 = arith.constant 0 : index
    %0 = vector.load %arg1[%c0, %c0_0] : memref<128x16xf32, #tpu.memory_space<vmem>>, vector<128x16xf32>
    %c0_1 = arith.constant 0 : index
    %c0_2 = arith.constant 0 : index
    %1 = vector.load %arg5[%c0_1, %c0_2] : memref<72x1xf32, #tpu.memory_space<vmem>>, vector<32x1xf32>
    %c32 = arith.constant 32 : index
    %c0_3 = arith.constant 0 : index
    %2 = vector.load %arg5[%c32, %c0_3] : memref<72x1xf32, #tpu.memory_space<vmem>>, vector<32x1xf32>
    %c64 = arith.constant 64 : index
    %c0_4 = arith.constant 0 : index
    %3 = vector.load %arg5[%c64, %c0_4] : memref<72x1xf32, #tpu.memory_space<vmem>>, vector<8x1xf32>
    %c0_5 = arith.constant 0 : index
    %c0_6 = arith.constant 0 : index
    %4 = vector.load %arg2[%c0_5, %c0_6] : memref<32x16xf32, #tpu.memory_space<vmem>>, vector<32x16xf32>
    %cst = arith.constant dense<0.000000e+00> : vector<32x128xf32>
    %5 = tpu.matmul %4, %0, %cst {dimension_numbers = #tpu.dot_dimension_numbers<[1], [1], [0], [0], [0, 0, 1, 0], [], []>} : vector<32x16xf32>, vector<128x16xf32>, vector<32x128xf32> -> vector<32x128xf32>
    %6 = vector.broadcast %1 : vector<32x1xf32> to vector<32x128xf32>
    %7 = arith.addf %5, %6 : vector<32x128xf32>
    %cst_7 = arith.constant 0.000000e+00 : f32
    %8 = vector.broadcast %cst_7 : f32 to vector<32x128xf32>
    %9 = arith.maximumf %7, %8 : vector<32x128xf32>
    %c0_8 = arith.constant 0 : index
    %c0_9 = arith.constant 0 : index
    %10 = vector.load %arg3[%c0_8, %c0_9] : memref<32x32xf32, #tpu.memory_space<vmem>>, vector<32x32xf32>
    %cst_10 = arith.constant dense<0.000000e+00> : vector<32x128xf32>
    %11 = tpu.matmul %10, %9, %cst_10 {dimension_numbers = #tpu.dot_dimension_numbers<[1], [0], [0], [1], [0, 0, 1, 1], [], []>} : vector<32x32xf32>, vector<32x128xf32>, vector<32x128xf32> -> vector<32x128xf32>
    %12 = vector.broadcast %2 : vector<32x1xf32> to vector<32x128xf32>
    %13 = arith.addf %11, %12 : vector<32x128xf32>
    %cst_11 = arith.constant 0.000000e+00 : f32
    %14 = vector.broadcast %cst_11 : f32 to vector<32x128xf32>
    %15 = arith.maximumf %13, %14 : vector<32x128xf32>
    %c0_12 = arith.constant 0 : index
    %c0_13 = arith.constant 0 : index
    %16 = vector.load %arg4[%c0_12, %c0_13] : memref<8x32xf32, #tpu.memory_space<vmem>>, vector<8x32xf32>
    %cst_14 = arith.constant dense<0.000000e+00> : vector<8x128xf32>
    %17 = tpu.matmul %16, %15, %cst_14 {dimension_numbers = #tpu.dot_dimension_numbers<[1], [0], [0], [1], [0, 0, 1, 1], [], []>} : vector<8x32xf32>, vector<32x128xf32>, vector<8x128xf32> -> vector<8x128xf32>
    %18 = vector.broadcast %3 : vector<8x1xf32> to vector<8x128xf32>
    %19 = arith.addf %17, %18 : vector<8x128xf32>
    %c0_15 = arith.constant 0 : index
    %c0_16 = arith.constant 0 : index
    %20 = vector.load %arg6[%c0_15, %c0_16] : memref<8x128xf32, #tpu.memory_space<vmem>>, vector<8x128xf32>
    tpu.vector_store %arg6[%c0_15, %c0_16], %19 {strides = array<i32>} : memref<8x128xf32, #tpu.memory_space<vmem>>, vector<8x128xf32>,
    return
  }
  func.func @transform_0(%arg0: i32) -> (i32, i32) {
    %c0_i32 = arith.constant 0 : i32
    %c0_i32_0 = arith.constant 0 : i32
    return %arg0, %c0_i32 : i32, i32
  }
  func.func @transform_1(%arg0: i32) -> (i32, i32) {
    %c0_i32 = arith.constant 0 : i32
    %c0_i32_0 = arith.constant 0 : i32
    %c0_i32_1 = arith.constant 0 : i32
    return %c0_i32, %c0_i32_0 : i32, i32
  }
  func.func @transform_2(%arg0: i32) -> (i32, i32) {
    %c0_i32 = arith.constant 0 : i32
    %c0_i32_0 = arith.constant 0 : i32
    %c0_i32_1 = arith.constant 0 : i32
    return %c0_i32, %c0_i32_0 : i32, i32
  }
  func.func @transform_3(%arg0: i32) -> (i32, i32) {
    %c0_i32 = arith.constant 0 : i32
    %c0_i32_0 = arith.constant 0 : i32
    %c0_i32_1 = arith.constant 0 : i32
    return %c0_i32, %c0_i32_0 : i32, i32
  }
  func.func @transform_4(%arg0: i32) -> (i32, i32) {
    %c0_i32 = arith.constant 0 : i32
    %c0_i32_0 = arith.constant 0 : i32
    %c0_i32_1 = arith.constant 0 : i32
    return %c0_i32, %c0_i32_0 : i32, i32
  }
  func.func @transform_5(%arg0: i32) -> (i32, i32) {
    %c0_i32 = arith.constant 0 : i32
    %c0_i32_0 = arith.constant 0 : i32
    return %c0_i32, %arg0 : i32, i32
  }
}

</mosaic_0001>

<bundles_post_ra>
// kernel: tpu_custom_call.1
= control target key start
LH: loop header
LB: loop body
LE: loop exit
PB: predicated region body
PF: predicated region fallthrough
CT: control target
= control target key end

     0   :  { %vm70_vm0 = vcmask 130048   ;;  %v654_v6 = vmov 0   ;;  %s850_s0 = inlined_call_operand.vmem [shape: f32[128,16], index: 0, kind: input, shape index: {}]   ;;  %s851_s1 = inlined_call_operand.vmem [shape: f32[32,16], index: 1, kind: input, shape index: {}]   ;;  %s852_s2 = inlined_call_operand.vmem [shape: f32[32,32], index: 2, kind: input, shape index: {}]   ;;  %s853_s3 = inlined_call_operand.vmem [shape: f32[8,32], index: 3, kind: input, shape index: {}]   ;;  %s854_s4 = inlined_call_operand.vmem [shape: f32[72,1], index: 4, kind: input, shape index: {}]   ;;  %s855_s5 = inlined_call_operand.hbm [shape: f32[8,128], index: 5, kind: output, shape index: {}]  }
   0x1   :  { %v21_v0 = vld [vmem:[%s850_s0] sm:$0xff]  ;;  %v22_v1 = vld [vmem:[%s850_s0 + $0x8] sm:$0xff]  ;;  %v23_v2 = vld [vmem:[%s850_s0 + $0x10] sm:$0xff]  ;;  %628 = vset.pattern.permute.xlu0 %v654_v6  ;;  %629 = vset.pattern.permute.xlu1 %v654_v6 }
   0x2   :  { %v561_v3 = vpack.c.bf16 %v22_v1, %v21_v0  ;;  %vm700_vm1 = vmpackc.low %vm70_vm0, %vm70_vm0  ;;  %v24_v5 = vld [vmem:[%s850_s0 + $0x18] sm:$0xff]  ;;  %v46_v8 = vld [vmem:[%s851_s1] sm:$0xff] }
   0x3   :  { %v567_v7 = vpack.c.bf16 %v24_v5, %v23_v2  ;;  %v25_v9 = vld [vmem:[%s850_s0 + $0x20] sm:$0xff]  ;;  %v26_v10 = vld [vmem:[%s850_s0 + $0x28] sm:$0xff]  ;;  %530 = vmatprep.mubr.msk.f32.mxu0 %vm70_vm0, %v46_v8  ;;  %v39_v12 = vld [vmem:[%s854_s4 + $0x10] sm:$0xff] }
   0x4   :  { %563 = vmatprep.subr.msk.bf16.mxu0 %vm700_vm1, %v561_v3  ;;  %v37_v11 = vld [vmem:[%s854_s4] sm:$0xff]  ;;  %62 = vperm.xlu1 %629, %v39_v12   ;;  %v573_v13 = vpack.c.bf16 %v26_v10, %v25_v9  ;;  %v38_v14 = vld [vmem:[%s854_s4 + $0x8] sm:$0xff]  ;;  %v40_v15 = vld [vmem:[%s854_s4 + $0x18] sm:$0xff] }
   0x5   :  { %566 = vmatpush3.bf16.xpose.msk.msra.mxu0 %vm700_vm1, %v561_v3  ;;  %52 = vperm.xlu0 %628, %v37_v11  }
   0x6   :  { %569 = vmatprep.subr.msk.bf16.mxu0 %vm700_vm1, %v567_v7 }
   0x7   :  { %10 = vsyncpa [#allocation3], 0  ;;  %v41_v16 = vld [vmem:[%s854_s4 + $0x20] sm:$0xff]  ;;  %v27_v17 = vld [vmem:[%s850_s0 + $0x30] sm:$0xff]  ;;  %vm244_vm2 = vcmask 261120   ;;  %v655_v61 = vmov 0.0|0.0  }
   0x8   :  { %67 = vperm.xlu1 %629, %v40_v15   ;;  %v28_v18 = vld [vmem:[%s850_s0 + $0x38] sm:$0xff]  ;;  %v42_v19 = vld [vmem:[%s854_s4 + $0x28] sm:$0xff]  ;;  %v43_v21 = vld [vmem:[%s854_s4 + $0x30] sm:$0xff]  ;;  %vm656_vm3 = vmmov 0   ;;  %v657_v62 = vmov 0.0   ;;  %s658_s7 = smov [#allocation2]  }
   0x9   :  { %57 = vperm.xlu0 %628, %v38_v14   ;;  %v579_v20 = vpack.c.bf16 %v28_v18, %v27_v17  ;;  %v44_v22 = vld [vmem:[%s854_s4 + $0x38] sm:$0xff]  ;;  %v45_v23 = vld [vmem:[%s854_s4 + $0x40] sm:$0xff]  ;;  %v30_v25 = vld [vmem:[%s850_s0 + $0x48] sm:$0xff]  ;;  %s432_s8 = sshll.u32 %s658_s7, 4  ;;  %s433_s8 = int_to_ptr.vmem [resolvable:$true] %s432_s8 }
   0xa   :  { %v29_v24 = vld [vmem:[%s850_s0 + $0x40] sm:$0xff]  ;;  %v31_v27 = vld [vmem:[%s850_s0 + $0x50] sm:$0xff]  ;;  %v32_v28 = vld [vmem:[%s850_s0 + $0x58] sm:$0xff]  ;;  %s630_s9 = scalar_lea.vmem %s433_s8, 128  ;;  %p635_p1 = scmp.lt.s32.totalorder %s433_s8, %s433_s8 }
   0xb   :  { %v585_v26 = vpack.c.bf16 %v30_v25, %v29_v24  ;;  %v591_v29 = vpack.c.bf16 %v32_v28, %v31_v27  ;;  %v33_v30 = vld [vmem:[%s850_s0 + $0x60] sm:$0xff]  ;;  %v34_v31 = vld [vmem:[%s850_s0 + $0x68] sm:$0xff]  ;;  %v35_v33 = vld [vmem:[%s850_s0 + $0x70] sm:$0xff]  ;;  %p631_p0 = scmp.ne.s32.totalorder %s433_s8, %s630_s9  ;;  %p636_p2 = scmp.lt.s32.totalorder %s630_s9, %s630_s9 }
   0xc   :  { %231 = vperm.xlu1 %629, %v42_v19   ;;  %v597_v32 = vpack.c.bf16 %v34_v31, %v33_v30  ;;  %v36_v34 = vld [vmem:[%s850_s0 + $0x78] sm:$0xff]  ;;  %v47_v36 = vld [vmem:[%s851_s1 + $0x8] sm:$0xff]  ;;  %v48_v37 = vld [vmem:[%s851_s1 + $0x10] sm:$0xff] }
   0xd   :  { %572 = vmatpush3.bf16.xpose.msk.msra.mxu0 %vm700_vm1, %v567_v7  ;;  %226 = vperm.xlu0 %628, %v41_v16   ;;  %v603_v35 = vpack.c.bf16 %v36_v34, %v35_v33  ;;  %v49_v38 = vld [vmem:[%s851_s1 + $0x18] sm:$0xff]  ;;  %v220_v39 = vld [vmem:[%s852_s2] sm:$0xff]  ;;  %v221_v58 = vld [vmem:[%s852_s2 + $0x8] sm:$0xff]  ;;  %p637_p3 = por %p636_p2, %p635_p1 }
   0xe   :  { %575 = vmatprep.subr.msk.bf16.mxu0 %vm700_vm1, %v573_v13  ;;  %544 = vmatprep.mubr.msk.f32.mxu1 %vm244_vm2, %v220_v39  ;;  %v222_v59 = vld [vmem:[%s852_s2 + $0x10] sm:$0xff]  ;;  %v223_v60 = vld [vmem:[%s852_s2 + $0x18] sm:$0xff]  ;;  %v346_v17 = vld [vmem:[%s853_s3] sm:$0xff] }
   0xf   :  { %p638_p4 = pnand %p637_p3, %p631_p0 }
  0x10   :  { %241 = vperm.xlu1 %629, %v44_v22  }
  0x11   :  { %236 = vperm.xlu0 %628, %v43_v21  }
  0x15   :  { %578 = vmatpush3.bf16.xpose.msk.msra.mxu0 %vm700_vm1, %v573_v13  ;;  %349 = vperm.xlu0 %628, %v45_v23  }
  0x16   :  { %581 = vmatprep.subr.msk.bf16.mxu0 %vm700_vm1, %v579_v20 }
  0x1d   :  { %584 = vmatpush3.bf16.xpose.msk.msra.mxu0 %vm700_vm1, %v579_v20 }
  0x1e   :  { %587 = vmatprep.subr.msk.bf16.mxu0 %vm700_vm1, %v585_v26 }
  0x25   :  { %590 = vmatpush3.bf16.xpose.msk.msra.mxu0 %vm700_vm1, %v585_v26 }
  0x26   :  { %593 = vmatprep.subr.msk.bf16.mxu0 %vm700_vm1, %v591_v29 }
  0x2d   :  { %596 = vmatpush3.bf16.xpose.msk.msra.mxu0 %vm700_vm1, %v591_v29 }
  0x2e   :  { %599 = vmatprep.subr.msk.bf16.mxu0 %vm700_vm1, %v597_v32 }
  0x35   :  { %602 = vmatpush3.bf16.xpose.msk.msra.mxu0 %vm700_vm1, %v597_v32 }
  0x36   :  { %605 = vmatprep.subr.msk.bf16.mxu0 %vm700_vm1, %v603_v35 }
  0x3d   :  { %608 = vmatpush3.bf16.xpose.msk.msra.mxu0 %vm700_vm1, %v603_v35 }
  0x44   :  { %531 = vmatmul.mubr.msk.f32.vlgmr.msra.gmra.mrb[0].mxu0 %vm70_vm0, %v47_v36 }
  0x45   :  { %533 = vmatprep.mubr.msk.f32.mxu0 %vm70_vm0, %v48_v37 }
  0x48   :  { %534 = vmatmul.mubr.msk.f32.gmra.mrb[2].mxu0 %vm70_vm0, %v49_v38 }
  0x83   :  { %v63_v41 = vpop.permute.xlu1 %62 }
  0x84   :  { %v53_v40 = vpop.permute.xlu0 %52 }
  0x87   :  { %v68_v48 = vpop.permute.xlu1 %67 }
  0x88   :  { %v58_v42 = vpop.permute.xlu0 %57 }
  0x8b   :  { %v232_v63 = vpop.permute.xlu1 %231 }
  0x8c   :  { %v227_v0 = vpop.permute.xlu0 %226 }
  0x8f   :  { %v242_v6 = vpop.permute.xlu1 %241 }
  0x90   :  { %v237_v9 = vpop.permute.xlu0 %236 }
  0x94   :  { %v350_v18 = vpop.permute.xlu0 %349 }
 0x117   :  { %v532_v43 = vpop.f32.mrb[0].mxu0 }
 0x118   :  { %v203_v44 = vadd.f32 %v532_v43, %v58_v42  ;;  %v197_v45 = vpop.f32.mrb[1].mxu0 }
 0x119   :  { %v198_v46 = vadd.f32 %v197_v45, %v53_v40 }
 0x11a   :  { %v217_v47 = vmax.f32 %v203_v44, 0.0 }
 0x11b   :  { %v216_v49 = vmax.f32 %v198_v46, 0.0  ;;  %v535_v50 = vpop.f32.mrb[2].mxu0 }
 0x11c   :  { %v213_v51 = vadd.f32 %v535_v50, %v68_v48  ;;  %v207_v52 = vpop.f32.mrb[3].mxu0 }
 0x11d   :  { %v208_v53 = vadd.f32 %v207_v52, %v63_v41  ;;  %v609_v54 = vpack.c.bf16 %v217_v47, %v216_v49 }
 0x11e   :  { %v219_v55 = vmax.f32 %v213_v51, 0.0 }
 0x11f   :  { %v218_v56 = vmax.f32 %v208_v53, 0.0  ;;  %610 = vmatprep.subr.bf16.mxu1 %v609_v54 }
 0x120   :  { %612 = vmatpush3.bf16.msra.mxu1 %v609_v54 }
 0x121   :  { %v613_v57 = vpack.c.bf16 %v219_v55, %v218_v56 }
 0x123   :  { %614 = vmatprep.subr.bf16.mxu1 %v613_v57 }
 0x124   :  { %616 = vmatpush3.bf16.msra.mxu1 %v613_v57 }
 0x125   :  { %617 = vmatprep.subr.bf16.mxu1 %v655_v61 }
 0x127   :  { %545 = vmatmul.mubr.msk.f32.vlgmr.msra.gmra.mrb[0].mxu1 %vm244_vm2, %v221_v58 }
 0x128   :  { %547 = vmatprep.mubr.msk.f32.mxu1 %vm244_vm2, %v222_v59 }
 0x12b   :  { %548 = vmatmul.mubr.msk.f32.gmra.mrb[2].mxu1 %vm244_vm2, %v223_v60 }
 0x12c   :  { %558 = vmatprep.mubr.msk.f32.mxu1 %vm656_vm3, %v657_v62 }
 0x1fa   :  { %v546_v1 = vpop.f32.mrb[0].mxu1 }
 0x1fb   :  { %v329_v2 = vadd.f32 %v546_v1, %v232_v63  ;;  %v323_v3 = vpop.f32.mrb[1].mxu1 }
 0x1fc   :  { %v324_v4 = vadd.f32 %v323_v3, %v227_v0 }
 0x1fd   :  { %v343_v5 = vmax.f32 %v329_v2, 0.0 }
 0x1fe   :  { %v342_v7 = vmax.f32 %v324_v4, 0.0  ;;  %v549_v8 = vpop.f32.mrb[2].mxu1 }
 0x1ff   :  { %v339_v10 = vadd.f32 %v549_v8, %v242_v6  ;;  %v333_v11 = vpop.f32.mrb[3].mxu1 }
 0x200   :  { %v618_v12 = vpack.c.bf16 %v343_v5, %v342_v7  ;;  %v334_v13 = vadd.f32 %v333_v11, %v237_v9 }
 0x201   :  { %v345_v14 = vmax.f32 %v339_v10, 0.0 }
 0x202   :  { %v344_v15 = vmax.f32 %v334_v13, 0.0  ;;  %619 = vmatpush3.bf16.msra.mxu1 %v618_v12 }
 0x203   :  { %620 = vmatprep.subr.bf16.mxu1 %v655_v61 }
 0x204   :  { %v621_v16 = vpack.c.bf16 %v345_v14, %v344_v15 }
 0x206   :  { %622 = vmatpush3.bf16.msra.mxu1 %v621_v16 }
 0x209   :  { %559 = vmatmul.mubr.msk.f32.vlgmr.msra.gmra.mrb[4].mxu1 %vm244_vm2, %v346_v17 }
 0x2dc   :  { %v421_v19 = vpop.f32.mrb[4].mxu1 }
 0x2dd   :  { %v422_v20 = vadd.f32 %v421_v19, %v350_v18  ;;  %v560_v21 = vpop.f32.mrb[5].mxu1 }
 0x2df   :  { %425 = vst [vmem:[#allocation2] sm:$0xff] %v422_v20 }
 0x2e0   :  { %641 = shalt.err (!%p638_p4)
}
 0x2e1   :  { %s642_s3 = scalar_lea.hbm %s855_s5, 128 }
 0x2e2   :  { %p643_p5 = scmp.ne.s32.totalorder %s855_s5, %s642_s3  ;;  %p646_p6 = scmp.lt.u32.totalorder %s642_s3, %s855_s5 }
 0x2e4   :  { %p648_p7 = pnand %p646_p6, %p643_p5 }
 0x2e6   :  { %651 = shalt.err (!%p648_p7)
}
 0x2e7   :  { %435 = dma.vmem_to_hbm [thread:$0]  %s433_s8, 128, %s855_s5, [#allocation3]  }
 0x2e8   :  { %652 = dma.done.wait [#allocation3], 128  }
 0x2e9   :  { %653 = vsyncadd [#allocation3], 4294967168 }
 0x2ea   :  { %439 = vsyncpa [#allocation3], 1 }

</bundles_post_ra>
